<compile_context>
chip_gen: v7x
topology: tpu7x:2x2x1
jax: 0.10.0
libtpu: 0.0.40
codegen_flags: <defaults>
</compile_context>

<pallas_src>
import jax
import jax.numpy as jnp
from jax.experimental import pallas as pl
from jax.experimental.pallas import tpu as pltpu


def _embedding_kernel(prev_ref, adj_ref, x1_ref, x3_ref, w2t_ref, out_ref):
    # Blocks: prev/x1/x3/out -> (TB, N, D); adj -> (TB, N, N); w2t -> (D, D)
    tb, n, d = prev_ref.shape

    # theta2 as one flattened GEMM over all fused batches: (TB*N, D) @ (D, D).
    # (Merging leading dims only; N is a multiple of 8 so this is layout-free.)
    prev_flat = prev_ref[...].reshape(tb * n, d)
    p = jnp.dot(prev_flat, w2t_ref[...], preferred_element_type=jnp.float32)

    # Feed the adjacency matmul in the same (possibly low-precision) dtype.
    p = p.reshape(tb, n, d).astype(adj_ref.dtype)

    # Per-graph aggregation on the MXU: x2[b] = adj[b] @ (prev[b] @ W2^T).
    x2 = jnp.einsum("bnm,bmd->bnd", adj_ref[...], p,
                    preferred_element_type=jnp.float32)

    # Elementwise epilogue in f32, then cast to the output dtype.
    s = x1_ref[...].astype(jnp.float32) + x2 + x3_ref[...].astype(jnp.float32)
    out_ref[...] = jnp.where(s >= 0, s, 0.01 * s).astype(out_ref.dtype)


def embedding_layer(prev_embeddings, adj, node_features_embeddings,
                    edge_features_embeddings, w2, *,
                    num_grid_steps=None, matmul_dtype=None):
    """Pallas implementation of EmbeddingLayer.forward (normalize=False, bias=False).

    num_grid_steps: how many batch-chunks to split the grid into.
        Default min(B, 2): 2 parallel steps keep both v7x TensorCores busy;
        on v5e/v6e (1 TC) the extra step costs ~0.35 us, negligible here.
    matmul_dtype: optional low-precision dtype (e.g. jnp.bfloat16) for the
        MXU operands (adj is 0/1 so exact); accumulation/epilogue stay f32.
    """
    B, N, D = prev_embeddings.shape
    assert adj.shape == (B, N, N)
    assert node_features_embeddings.shape == (B, N, D)
    assert edge_features_embeddings.shape == (B, N, D)
    assert w2.shape == (D, D)

    out_dtype = prev_embeddings.dtype

    # Hoist the nn.Linear transpose out of the kernel (applied once by XLA).
    w2t = w2.T
    if matmul_dtype is not None:
        prev_embeddings = prev_embeddings.astype(matmul_dtype)
        adj = adj.astype(matmul_dtype)
        w2t = w2t.astype(matmul_dtype)

    if num_grid_steps is None:
        num_grid_steps = min(B, 2)
    num_grid_steps = max(1, min(int(num_grid_steps), B))
    TB = pl.cdiv(B, num_grid_steps)
    grid = (pl.cdiv(B, TB),)

    bnd_spec = pl.BlockSpec((TB, N, D), lambda b: (b, 0, 0))
    adj_spec = pl.BlockSpec((TB, N, N), lambda b: (b, 0, 0))
    w_spec = pl.BlockSpec((D, D), lambda b: (0, 0))

    def _nbytes(a):
        return a.size * a.dtype.itemsize

    cost = pl.CostEstimate(
        flops=2 * B * (N * N * D + N * D * D),
        transcendentals=0,
        bytes_accessed=(_nbytes(prev_embeddings) + _nbytes(adj)
                        + _nbytes(node_features_embeddings)
                        + _nbytes(edge_features_embeddings)
                        + _nbytes(w2t)
                        + B * N * D * jnp.dtype(out_dtype).itemsize),
    )

    # NOTE: for large N, adj blocks of (TB, N, N) f32 will exceed scoped VMEM
    # (esp. v7x's 64 MiB). That regime needs a K-tiled reduction grid axis over
    # adj columns with an f32 VMEM accumulator ('arbitrary', placed last).

    return pl.pallas_call(
        _embedding_kernel,
        out_shape=jax.ShapeDtypeStruct((B, N, D), out_dtype),
        grid_spec=pltpu.PrefetchScalarGridSpec(
            num_scalar_prefetch=0,
            grid=grid,
            in_specs=[bnd_spec, adj_spec, bnd_spec, bnd_spec, w_spec],
            out_specs=bnd_spec,
        ),
        compiler_params=pltpu.CompilerParams(
            dimension_semantics=("parallel",)),
        cost_estimate=cost,
    )(prev_embeddings, adj, node_features_embeddings,
      edge_features_embeddings, w2t)


def _reference(prev_embeddings, adj, x1, x3, w2):
    x2 = jnp.einsum("bnm,bmd->bnd", adj, prev_embeddings) @ w2.T
    s = x1 + x2 + x3
    return jnp.where(s >= 0, s, 0.01 * s)


if __name__ == "__main__":
    B, N, D = 2, 16, 32  # batch of graphs, N vertices, embed_dim
    key = jax.random.PRNGKey(0)
    k1, k2, k3, k4, k5 = jax.random.split(key, 5)

    prev = jax.random.normal(k1, (B, N, D), dtype=jnp.float32)
    # 0/1 adjacency
    adj_raw = jax.random.uniform(k2, (B, N, N))
    adj = (adj_raw < 0.3).astype(jnp.float32)
    x1 = jax.random.normal(k3, (B, N, D), dtype=jnp.float32)
    x3 = jax.random.normal(k4, (B, N, D), dtype=jnp.float32)
    # theta2 weight, nn.Linear-style uniform bound
    bound = 1.0 / jnp.sqrt(jnp.float32(D))
    w2 = jax.random.uniform(k5, (D, D), minval=-bound, maxval=bound,
                            dtype=jnp.float32)

    ref = _reference(prev, adj, x1, x3, w2)

    # Full-precision path (tolerance allows f32 reassociation of adj@(prev@W2^T)).
    out = jax.block_until_ready(embedding_layer(prev, adj, x1, x3, w2))
    assert out.shape == (B, N, D)
    assert jnp.allclose(out, ref, atol=1e-4, rtol=1e-4), "mismatch vs reference (f32)"

    # Low-precision MXU path (adj 0/1 is exact in bf16; prev/W2 rounded).
    out_bf16 = jax.block_until_ready(
        embedding_layer(prev, adj, x1, x3, w2, matmul_dtype=jnp.bfloat16))
    assert jnp.allclose(out_bf16, ref, atol=5e-2, rtol=5e-2), "mismatch vs reference (bf16)"

    print("KERNEL_OK")
</pallas_src>

<mosaic_0001>
module attributes {stable_mosaic.version = 11 : i64} {
  func.func @_embedding_kernel(%arg0: i32, %arg1: memref<1x16x32xf32, #tpu.memory_space<vmem>>, %arg2: memref<1x16x16xf32, #tpu.memory_space<vmem>>, %arg3: memref<1x16x32xf32, #tpu.memory_space<vmem>>, %arg4: memref<1x16x32xf32, #tpu.memory_space<vmem>>, %arg5: memref<32x32xf32, #tpu.memory_space<vmem>>, %arg6: memref<1x16x32xf32, #tpu.memory_space<vmem>>) attributes {dimension_semantics = [#tpu.dimension_semantics<parallel>], iteration_bounds = array<i64: 2>, scalar_prefetch = 0 : i64, scratch_operands = 0 : i64, tpu.core_type = #tpu.core_type<tc>, window_params = [{transform_indices = @transform_0, window_bounds = array<i64: 1, 16, 32>}, {transform_indices = @transform_1, window_bounds = array<i64: 1, 16, 16>}, {transform_indices = @transform_2, window_bounds = array<i64: 1, 16, 32>}, {transform_indices = @transform_3, window_bounds = array<i64: 1, 16, 32>}, {pipeline_mode = #tpu.pipeline_mode<synchronous>, transform_indices = @transform_4, window_bounds = array<i64: 32, 32>}, {transform_indices = @transform_5, window_bounds = array<i64: 1, 16, 32>}]} {
    %c0 = arith.constant 0 : index
    %c0_0 = arith.constant 0 : index
    %c0_1 = arith.constant 0 : index
    %0 = vector.load %arg1[%c0, %c0_0, %c0_1] : memref<1x16x32xf32, #tpu.memory_space<vmem>>, vector<1x16x32xf32>
    %1 = vector.shape_cast %0 : vector<1x16x32xf32> to vector<16x32xf32>
    %c0_2 = arith.constant 0 : index
    %c0_3 = arith.constant 0 : index
    %2 = vector.load %arg5[%c0_2, %c0_3] : memref<32x32xf32, #tpu.memory_space<vmem>>, vector<32x32xf32>
    %cst = arith.constant dense<0.000000e+00> : vector<16x32xf32>
    %3 = tpu.matmul %1, %2, %cst {dimension_numbers = #tpu.dot_dimension_numbers<[1], [0], [0], [1], [0, 0, 1, 1], [], []>} : vector<16x32xf32>, vector<32x32xf32>, vector<16x32xf32> -> vector<16x32xf32>
    %4 = vector.shape_cast %3 : vector<16x32xf32> to vector<1x16x32xf32>
    %c0_4 = arith.constant 0 : index
    %c0_5 = arith.constant 0 : index
    %c0_6 = arith.constant 0 : index
    %5 = vector.load %arg2[%c0_4, %c0_5, %c0_6] : memref<1x16x16xf32, #tpu.memory_space<vmem>>, vector<1x16x16xf32>
    "tpu.trace_start"() <{level = 10 : i32, message = "bnm,bmd->bnd"}> : () -> ()
    %cst_7 = arith.constant dense<0.000000e+00> : vector<1x16x32xf32>
    %6 = tpu.matmul %5, %4, %cst_7 {dimension_numbers = #tpu.dot_dimension_numbers<[2], [1], [1], [2], [0, 0, 0, 1, 1, 2], [0], [0]>} : vector<1x16x16xf32>, vector<1x16x32xf32>, vector<1x16x32xf32> -> vector<1x16x32xf32>
    "tpu.trace_stop"() : () -> ()
    %c0_8 = arith.constant 0 : index
    %c0_9 = arith.constant 0 : index
    %c0_10 = arith.constant 0 : index
    %7 = vector.load %arg3[%c0_8, %c0_9, %c0_10] : memref<1x16x32xf32, #tpu.memory_space<vmem>>, vector<1x16x32xf32>
    %8 = arith.addf %7, %6 : vector<1x16x32xf32>
    %c0_11 = arith.constant 0 : index
    %c0_12 = arith.constant 0 : index
    %c0_13 = arith.constant 0 : index
    %9 = vector.load %arg4[%c0_11, %c0_12, %c0_13] : memref<1x16x32xf32, #tpu.memory_space<vmem>>, vector<1x16x32xf32>
    %10 = arith.addf %8, %9 : vector<1x16x32xf32>
    %cst_14 = arith.constant 0.000000e+00 : f32
    %11 = vector.broadcast %cst_14 : f32 to vector<1x16x32xf32>
    %12 = arith.cmpf oge, %10, %11 : vector<1x16x32xf32>
    %cst_15 = arith.constant 0.00999999977 : f32
    %13 = vector.broadcast %cst_15 : f32 to vector<1x16x32xf32>
    %14 = arith.mulf %13, %10 : vector<1x16x32xf32>
    %15 = arith.select %12, %10, %14 : vector<1x16x32xi1>, vector<1x16x32xf32>
    %c0_16 = arith.constant 0 : index
    %c0_17 = arith.constant 0 : index
    %c0_18 = arith.constant 0 : index
    %16 = vector.load %arg6[%c0_16, %c0_17, %c0_18] : memref<1x16x32xf32, #tpu.memory_space<vmem>>, vector<1x16x32xf32>
    tpu.vector_store %arg6[%c0_16, %c0_17, %c0_18], %15 {strides = array<i32>} : memref<1x16x32xf32, #tpu.memory_space<vmem>>, vector<1x16x32xf32>,
    return
  }
  func.func @transform_0(%arg0: i32) -> (i32, i32, i32) {
    %c0_i32 = arith.constant 0 : i32
    %c0_i32_0 = arith.constant 0 : i32
    %c0_i32_1 = arith.constant 0 : i32
    return %arg0, %c0_i32, %c0_i32_0 : i32, i32, i32
  }
  func.func @transform_1(%arg0: i32) -> (i32, i32, i32) {
    %c0_i32 = arith.constant 0 : i32
    %c0_i32_0 = arith.constant 0 : i32
    %c0_i32_1 = arith.constant 0 : i32
    return %arg0, %c0_i32, %c0_i32_0 : i32, i32, i32
  }
  func.func @transform_2(%arg0: i32) -> (i32, i32, i32) {
    %c0_i32 = arith.constant 0 : i32
    %c0_i32_0 = arith.constant 0 : i32
    %c0_i32_1 = arith.constant 0 : i32
    return %arg0, %c0_i32, %c0_i32_0 : i32, i32, i32
  }
  func.func @transform_3(%arg0: i32) -> (i32, i32, i32) {
    %c0_i32 = arith.constant 0 : i32
    %c0_i32_0 = arith.constant 0 : i32
    %c0_i32_1 = arith.constant 0 : i32
    return %arg0, %c0_i32, %c0_i32_0 : i32, i32, i32
  }
  func.func @transform_4(%arg0: i32) -> (i32, i32) {
    %c0_i32 = arith.constant 0 : i32
    %c0_i32_0 = arith.constant 0 : i32
    %c0_i32_1 = arith.constant 0 : i32
    return %c0_i32, %c0_i32_0 : i32, i32
  }
  func.func @transform_5(%arg0: i32) -> (i32, i32, i32) {
    %c0_i32 = arith.constant 0 : i32
    %c0_i32_0 = arith.constant 0 : i32
    %c0_i32_1 = arith.constant 0 : i32
    return %arg0, %c0_i32, %c0_i32_0 : i32, i32, i32
  }
}

</mosaic_0001>

<bundles_post_ra>
// kernel: tpu_custom_call.1
= control target key start
LH: loop header
LB: loop body
LE: loop exit
PB: predicated region body
PF: predicated region fallthrough
CT: control target
= control target key end

     0   :  { %s1506_s0 = inlined_call_operand.hbm [shape: f32[2,16,32], index: 0, kind: input, shape index: {}]   ;;  %s1507_s1 = inlined_call_operand.hbm [shape: f32[2,16,16], index: 1, kind: input, shape index: {}]   ;;  %s1508_s2 = inlined_call_operand.hbm [shape: f32[2,16,32], index: 2, kind: input, shape index: {}]   ;;  %s1509_s3 = inlined_call_operand.hbm [shape: f32[2,16,32], index: 3, kind: input, shape index: {}]   ;;  %s1510_s4 = inlined_call_operand.hbm [shape: f32[32,32], index: 4, kind: input, shape index: {}]   ;;  %s1511_s5 = inlined_call_operand.hbm [shape: f32[2,16,32], index: 5, kind: output, shape index: {}]  }
   0x1   :  { %1524 = sst [smem:[#allocation19_spill]] %s1507_s1 }
   0x2   :  { %1525 = sst [smem:[#allocation20_spill]] %s1510_s4 }
   0x3   :  { %10 = vsyncpa [#allocation3], 0 }
   0x4   :  { %12 = vsyncpa [#allocation3 + $0x1], 0 }
   0x5   :  { %13 = vsyncpa [#allocation6], 0 }
   0x6   :  { %15 = vsyncpa [#allocation6 + $0x1], 0 }
   0x7   :  { %16 = vsyncpa [#allocation9], 0 }
   0x8   :  { %18 = vsyncpa [#allocation9 + $0x1], 0 }
   0x9   :  { %19 = vsyncpa [#allocation4], 0 }
   0xa   :  { %21 = vsyncpa [#allocation4 + $0x1], 0  ;;  %s1145_s18 = smov 0   ;;  %s1147_s19 = smov 0  }
   0xb   :  { %s1149_s20 = smov 0   ;;  %s1151_s21 = smov 0  }
   0xc LB: > { %s1166_s22 = sadd.s32 4294967295, %s1103_s21   ;;  %s724_s23 = sadd.s32 4294967294, %s1103_s21   ;;  %s1103_s21 = sphi %s1151_s21, %s1551_s21   ;;  %s1099_s20 = sphi %s1149_s20, %s1555_s20   ;;  %s1095_s19 = sphi %s1147_s19, %s1554_s19   ;;  %s1091_s18 = sphi %s1145_s18, %s1553_s18  }
   0xd   : > { %s1170_s24 = sadd.s32 1, %s1103_s21   ;;  %s34_s25 = sadd.s32 1, %s1099_s20 }
   0xe   : > { %1526 = sst [smem:[#allocation17_spill]] %s1170_s24  ;;  %s31_s26 = ssub.s32 %s1103_s21, %s1170_s24 }
   0xf   : > { %p41_p0 = scmp.ne.s32.totalorder %s1099_s20, %s1095_s19  ;;  %p32_p1 = scmp.eq.s32.totalorder %s31_s26, 0 }
  0x10   : > { %p42_p2 = scmp.eq.s32.totalorder %s1103_s21, 0  ;;  %p47_p3 = scmp.ne.s32.totalorder %s1095_s19, %s1091_s18 }
  0x11   : > { %p1512_p4 = scmp.eq.s32.totalorder %s1166_s22, 0  ;;  %p170_p7 = scmp.eq.s32.totalorder %s1166_s22, 1 }
  0x12   : > { %s1182_s27 = scalar_select %p32_p1, %s1099_s20, %s34_s25  }
  0x13   : > { %p1184_p5 = por %p42_p2, %p41_p0  ;;  %p1190_p6 = por %p1512_p4, %p47_p3 }
  0x14   : > { %1527 = sst [smem:[#allocation18_spill]] %s1182_s27  ;;  %p176_p8 = scmp.eq.s32.totalorder %s724_s23, 1 }
  0x15   : > { %s1528_s28 = scalar_select %p1184_p5, 1, 0 }
  0x16   : > { %s1529_s29 = scalar_select %p1190_p6, 1, 0 }
  0x17   : > { %p725_p9 = scmp.ge.s32.totalorder %s1103_s21, 1  ;;  %p183_p10 = scmp.lt.s32.totalorder %s1103_s21, 3 }
  0x18   : > { %p1197_p11 = por %p170_p7, %p41_p0  ;;  %p1201_p12 = por %p176_p8, %p47_p3 }
  0x19   : > { %p1205_p13 = pnand %p725_p9, %p183_p10  ;;  %s1105_s8 = smov [#allocation10]  }
  0x1a   : > { %s1530_s30 = scalar_select %p1197_p11, 1, 0 }
  0x1b   : > { %s1531_s6 = scalar_select %p1201_p12, 1, 0 }
  0x1c   : > { %s1532_s7 = scalar_select %p1205_p13, 1, 0 }
  0x1d   : > { %p815_p1 = pneg %p1205_p13  ;;  %s195_s9 = sshll.u32 %s1105_s8, 4  ;;  %s196_s9 = int_to_ptr.vmem [resolvable:$true] %s195_s9 }
  0x1e   : > { %s1516_s11 = sand.u32 1, %s1099_s20   ;;  %s1534_s4 = sld [smem:[#allocation20_spill]] }
  0x1f   : > { %p1213_p2 = pnand %p815_p1, %p1512_p4  ;;  %s1222_s12 = sshll.u32 %s1516_s11, 4 }
  0x21   : > { %p879_p8 = pneg %p1213_p2 }
  0x24   : > { %s877_s15 = scalar_lea.hbm %s1534_s4, 512 }
  0x25   : > { %p878_p7 = scmp.ne.s32.totalorder %s1534_s4, %s877_s15  ;;  %p884_p1 = scmp.lt.u32.totalorder %s877_s15, %s1534_s4 }
  0x27   : > { %p880_p9 = pnand %p879_p8, %p878_p7 }
  0x29   : > { %p881_p10 = pneg %p880_p9 }
  0x2b   : > { %p886_p0 = pnand %p884_p1, %p881_p10 }
  0x2d   : > { %889 = shalt.err (!%p886_p0)
}
  0x2e   : > { %s890_s26 = scalar_lea.vmem %s196_s9, 512  ;;  %p898_p11 = scmp.lt.s32.totalorder %s196_s9, %s196_s9 }
  0x2f   : > { %p891_p4 = scmp.ne.s32.totalorder %s196_s9, %s890_s26  ;;  %p899_p6 = scmp.lt.s32.totalorder %s890_s26, %s890_s26 }
  0x31   : > { %p893_p3 = pnand %p891_p4, %p879_p8  ;;  %p900_p13 = por %p899_p6, %p898_p11 }
  0x33   : > { %p894_p12 = pneg %p893_p3 }
  0x35   : > { %p901_p5 = pnand %p900_p13, %p894_p12 }
  0x37   : > { %904 = shalt.err (!%p901_p5)
}
  0x38   : > { %s1517_s8 = smov 128   ;;  %s1519_s13 = smov 8  }
  0x39   : > { %818 = dma.hbm_to_vmem [thread:$0]  (!%p1213_p2), %s1534_s4, 512, %s196_s9, [#allocation9], %s1517_s8, %s1517_s8, %s1519_s13  }
  0x3a   : > { %s1244_s16 = sshll.u32 %s1103_s21, 8  ;;  %p1535_p4 = scmp.ne.s32.totalorder %s1528_s28, 0 }
  0x3b   : > { %p1536_p5 = scmp.lt.s32.totalorder %s1103_s21, 2  ;;  %s1521_s23 = sand.u32 1, %s1103_s21  }
  0x3c   : > { %s1538_s1 = sld [smem:[#allocation19_spill]]  ;;  %s234_s9 = scalar_lea.vmem [#allocation5], %s1222_s12 }
  0x3d   : > { %p1250_p6 = pnand %p1536_p5, %p1535_p4  ;;  %s241_s14 = sshll.u32 %s234_s9, 4  ;;  %s1262_s14 = int_to_ptr.vmem [resolvable:$true] %s241_s14 }
  0x3e   : > { %s1266_s28 = scalar_lea.sflag [#allocation6], %s1521_s23 }
  0x3f   : > { %p1272_p12 = pneg %p1250_p6 }
  0x42   : > { %s1259_s26 = scalar_lea.hbm %s1538_s1, %s1244_s16  ;;  %s910_s9 = scalar_lea.hbm %s1538_s1, 512 }
  0x43   : > { %s905_s15 = scalar_lea.hbm %s1259_s26, 256  ;;  %p911_p0 = scmp.lt.u32.totalorder %s1259_s26, %s1538_s1 }
  0x44   : > { %p906_p11 = scmp.ne.s32.totalorder %s1259_s26, %s905_s15  ;;  %p912_p3 = scmp.lt.u32.totalorder %s910_s9, %s905_s15 }
  0x45   : > { %p914_p8 = scmp.lt.u32.totalorder %s905_s15, %s1259_s26 }
  0x46   : > { %p908_p13 = pnand %p1272_p12, %p906_p11  ;;  %p913_p7 = por %p912_p3, %p911_p0 }
  0x48   : > { %p909_p2 = pneg %p908_p13  ;;  %p915_p9 = por %p914_p8, %p913_p7 }
  0x4a   : > { %p916_p10 = pnand %p915_p9, %p909_p2 }
  0x4c   : > { %919 = shalt.err (!%p916_p10)
}
  0x4d   : > { %s920_s23 = scalar_lea.vmem %s1262_s14, 256  ;;  %s1108_s25 = smov [#allocation5]  }
  0x4e   : > { %p921_p1 = scmp.ne.s32.totalorder %s1262_s14, %s920_s23  ;;  %s925_s10 = sshll.u32 %s1108_s25, 4  ;;  %s926_s10 = int_to_ptr.vmem [resolvable:$false] %s925_s10 }
  0x4f   : > { %s927_s8 = scalar_lea.vmem %s926_s10, 512  ;;  %p928_p11 = scmp.lt.s32.totalorder %s1262_s14, %s926_s10 }
  0x50   : > { %p923_p4 = pnand %p921_p1, %p1272_p12  ;;  %p929_p13 = scmp.lt.s32.totalorder %s927_s8, %s920_s23 }
  0x52   : > { %p924_p5 = pneg %p923_p4  ;;  %p930_p0 = por %p929_p13, %p928_p11 }
  0x54   : > { %p931_p3 = pnand %p930_p0, %p924_p5 }
  0x56   : > { %934 = shalt.err (!%p931_p3)
}
  0x57   : > { %s1540_s13 = smov 8   ;;  %s1541_s15 = smov 128  }
  0x58   : > { %825 = dma.hbm_to_vmem [thread:$0]  (!%p1250_p6), %s1259_s26, 256, %s1262_s14, %s1266_s28, %s1541_s15, %s1541_s15, %s1540_s13  }
  0x59   : > { %s1303_s23 = scalar_lea.hbm %s1506_s0, %s1244_s16  ;;  %s213_s10 = scalar_lea.vmem [#allocation2], %s1222_s12 }
  0x5a   : > { %s220_s8 = sshll.u32 %s213_s10, 4  ;;  %s1542_s1 = sand.u32 1, %s1099_s20   ;;  %s1306_s8 = int_to_ptr.vmem [resolvable:$true] %s220_s8 }
  0x5b   : > { %s1310_s4 = scalar_lea.sflag [#allocation3], %s1542_s1  ;;  %s935_s27 = scalar_lea.hbm %s1303_s23, 256 }
  0x5c   : > { %p936_p2 = scmp.ne.s32.totalorder %s1303_s23, %s935_s27  ;;  %s940_s9 = scalar_lea.hbm %s1506_s0, 512 }
  0x5d   : > { %p941_p9 = scmp.lt.u32.totalorder %s1303_s23, %s1506_s0  ;;  %p942_p10 = scmp.lt.u32.totalorder %s940_s9, %s935_s27 }
  0x5e   : > { %p938_p7 = pnand %p936_p2, %p1272_p12  ;;  %p944_p4 = scmp.lt.u32.totalorder %s935_s27, %s1303_s23 }
  0x5f   : > { %p943_p1 = por %p942_p10, %p941_p9 }
  0x60   : > { %p939_p8 = pneg %p938_p7 }
  0x61   : > { %p945_p5 = por %p944_p4, %p943_p1 }
  0x63   : > { %p946_p11 = pnand %p945_p5, %p939_p8 }
  0x65   : > { %949 = shalt.err (!%p946_p11)
}
  0x66   : > { %s950_s1 = scalar_lea.vmem %s1306_s8, 256  ;;  %s1109_s10 = smov [#allocation2]  }
  0x67   : > { %p951_p13 = scmp.ne.s32.totalorder %s1306_s8, %s950_s1  ;;  %s955_s26 = sshll.u32 %s1109_s10, 4  ;;  %s956_s26 = int_to_ptr.vmem [resolvable:$false] %s955_s26 }
  0x68   : > { %s957_s24 = scalar_lea.vmem %s956_s26, 512  ;;  %p958_p2 = scmp.lt.s32.totalorder %s1306_s8, %s956_s26 }
  0x69   : > { %p953_p0 = pnand %p951_p13, %p1272_p12  ;;  %p959_p7 = scmp.lt.s32.totalorder %s957_s24, %s950_s1 }
  0x6b   : > { %p954_p3 = pneg %p953_p0  ;;  %p960_p9 = por %p959_p7, %p958_p2 }
  0x6d   : > { %p961_p10 = pnand %p960_p9, %p954_p3 }
  0x6f   : > { %964 = shalt.err (!%p961_p10)
}
  0x70   : > { %822 = dma.hbm_to_vmem [thread:$0]  (!%p1250_p6), %s1303_s23, 256, %s1306_s8, %s1310_s4, %s1541_s15, %s1541_s15, %s1540_s13  }
  0x71   : > { %s1341_s9 = scalar_lea.hbm %s1508_s2, %s1244_s16  ;;  %s255_s25 = scalar_lea.vmem [#allocation7], %s1222_s12 }
  0x72   : > { %s262_s1 = sshll.u32 %s255_s25, 4  ;;  %s965_s10 = scalar_lea.hbm %s1341_s9, 256  ;;  %s1344_s1 = int_to_ptr.vmem [resolvable:$true] %s262_s1 }
  0x73   : > { %p966_p8 = scmp.ne.s32.totalorder %s1341_s9, %s965_s10  ;;  %s970_s23 = scalar_lea.hbm %s1508_s2, 512 }
  0x74   : > { %p971_p5 = scmp.lt.u32.totalorder %s1341_s9, %s1508_s2  ;;  %p972_p11 = scmp.lt.u32.totalorder %s970_s23, %s965_s10 }
  0x75   : > { %p968_p1 = pnand %p966_p8, %p1272_p12  ;;  %p974_p0 = scmp.lt.u32.totalorder %s965_s10, %s1341_s9 }
  0x76   : > { %p973_p13 = por %p972_p11, %p971_p5 }
  0x77   : > { %p969_p4 = pneg %p968_p1 }
  0x78   : > { %p975_p3 = por %p974_p0, %p973_p13 }
  0x7a   : > { %p976_p2 = pnand %p975_p3, %p969_p4 }
  0x7c   : > { %979 = shalt.err (!%p976_p2)
}
  0x7d   : > { %s980_s27 = scalar_lea.vmem %s1344_s1, 256  ;;  %s1110_s14 = smov [#allocation7]  }
  0x7e   : > { %p981_p7 = scmp.ne.s32.totalorder %s1344_s1, %s980_s27  ;;  %s985_s25 = sshll.u32 %s1110_s14, 4  ;;  %s986_s25 = int_to_ptr.vmem [resolvable:$false] %s985_s25 }
  0x7f   : > { %s987_s26 = scalar_lea.vmem %s986_s25, 512  ;;  %p988_p8 = scmp.lt.s32.totalorder %s1344_s1, %s986_s25 }
  0x80   : > { %p983_p9 = pnand %p981_p7, %p1272_p12  ;;  %p989_p1 = scmp.lt.s32.totalorder %s987_s26, %s980_s27 }
  0x82   : > { %p984_p10 = pneg %p983_p9  ;;  %p990_p5 = por %p989_p1, %p988_p8 }
  0x84   : > { %p991_p11 = pnand %p990_p5, %p984_p10 }
  0x86   : > { %994 = shalt.err (!%p991_p11)
}
  0x87   : > { %828 = dma.hbm_to_vmem [thread:$0]  (!%p1250_p6), %s1341_s9, 256, %s1344_s1, %s1266_s28, %s1541_s15, %s1541_s15, %s1540_s13  }
  0x88   : > { %s1375_s23 = scalar_lea.hbm %s1509_s3, %s1244_s16  ;;  %s276_s8 = scalar_lea.vmem [#allocation8], %s1222_s12 }
  0x89   : > { %s283_s24 = sshll.u32 %s276_s8, 4  ;;  %s1543_s27 = sand.u32 1, %s1103_s21   ;;  %s1378_s24 = int_to_ptr.vmem [resolvable:$true] %s283_s24 }
  0x8a   : > { %s1382_s14 = scalar_lea.sflag [#allocation9], %s1543_s27  ;;  %s995_s25 = scalar_lea.hbm %s1375_s23, 256 }
  0x8b   : > { %p996_p4 = scmp.ne.s32.totalorder %s1375_s23, %s995_s25  ;;  %s1000_s16 = scalar_lea.hbm %s1509_s3, 512 }
  0x8c   : > { %p1001_p3 = scmp.lt.u32.totalorder %s1375_s23, %s1509_s3  ;;  %p1002_p2 = scmp.lt.u32.totalorder %s1000_s16, %s995_s25 }
  0x8d   : > { %p998_p13 = pnand %p996_p4, %p1272_p12  ;;  %p1004_p9 = scmp.lt.u32.totalorder %s995_s25, %s1375_s23 }
  0x8e   : > { %p1003_p7 = por %p1002_p2, %p1001_p3 }
  0x8f   : > { %p999_p0 = pneg %p998_p13 }
  0x90   : > { %p1005_p10 = por %p1004_p9, %p1003_p7 }
  0x92   : > { %p1006_p8 = pnand %p1005_p10, %p999_p0 }
  0x94   : > { %1009 = shalt.err (!%p1006_p8)
}
  0x95   : > { %s1010_s12 = scalar_lea.vmem %s1378_s24, 256  ;;  %s1111_s10 = smov [#allocation8]  }
  0x96   : > { %p1011_p1 = scmp.ne.s32.totalorder %s1378_s24, %s1010_s12  ;;  %s1015_s4 = sshll.u32 %s1111_s10, 4  ;;  %s1016_s4 = int_to_ptr.vmem [resolvable:$false] %s1015_s4 }
  0x97   : > { %s1017_s8 = scalar_lea.vmem %s1016_s4, 512  ;;  %p1018_p4 = scmp.lt.s32.totalorder %s1378_s24, %s1016_s4 }
  0x98   : > { %p1013_p5 = pnand %p1011_p1, %p1272_p12  ;;  %p1019_p13 = scmp.lt.s32.totalorder %s1017_s8, %s1010_s12 }
  0x9a   : > { %p1014_p11 = pneg %p1013_p5  ;;  %p1020_p3 = por %p1019_p13, %p1018_p4 }
  0x9c   : > { %p1021_p2 = pnand %p1020_p3, %p1014_p11 }
  0x9e   : > { %1024 = shalt.err (!%p1021_p2)
}
  0x9f   : > { %831 = dma.hbm_to_vmem [thread:$0]  (!%p1250_p6), %s1375_s23, 256, %s1378_s24, %s1382_s14, %s1541_s15, %s1541_s15, %s1540_s13  }
  0xa0   : > { %p1544_p12 = scmp.ne.s32.totalorder %s1532_s7, 0 }
  0xa1   : > { %s1412_s11 = sand.u32 (!%p1544_p12), 1, %s1095_s19   ;;  %p1545_p0 = scmp.ne.s32.totalorder (!%p1544_p12), %s1529_s29, 0 }
  0xa2   : > { %295 = sbr.rel (%p1544_p12) target bundleno = 644 (0x284), region = 40  ;;  %s1415_s27 = sshll.u32 (!%p1544_p12), %s1412_s11, 4 }
  0xa3   : > { %s298_s17 = scalar_lea.sflag (!%p1544_p12), [#allocation3], %s1412_s11  ;;  %s301_s25 = scalar_lea.vmem (!%p1544_p12), [#allocation2], %s1415_s27 }
  0xa9   : > { %1070 = dma.done.wait (%p1545_p0), %s298_s17, 256  }
  0xaa   : > { %1072 = vsyncadd (%p1545_p0), %s298_s17, 4294967040  ;;  %s306_s7 = sand.u32 1, %s1166_s22   ;;  %s310_s15 = scalar_lea.vmem [#allocation5], %s1415_s27 }
  0xab   : > { %s307_s13 = scalar_lea.sflag [#allocation6], %s306_s7 }
  0xac   : > { %1074 = dma.done.wait (%p1545_p0), %s307_s13, 512  }
  0xad   : > { %1076 = vsyncadd (%p1545_p0), %s307_s13, 4294966784  ;;  %s319_s23 = scalar_lea.vmem [#allocation7], %s1415_s27  ;;  %s325_s24 = scalar_lea.sflag [#allocation9], %s306_s7 }
  0xae   : > { %s328_s14 = scalar_lea.vmem [#allocation8], %s1415_s27 }
  0xaf   : > { %1078 = dma.done.wait (%p1545_p0), %s325_s24, 256  }
  0xb0   : > { %1080 = vsyncadd (%p1545_p0), %s325_s24, 4294967040  ;;  %p1546_p6 = scmp.eq.s32.totalorder %s1166_s22, 0 }
  0xb2   : > { %1082 = dma.done.wait (%p1546_p6), [#allocation9], 512   ;;  %p1547_p7 = pmov %p1546_p6 }
  0xb3   : > { %vm380_vm0 = vcmask 261120   ;;  %v376_v0 = vld [vmem:[#allocation10] sm:$0xff]  ;;  %v377_v1 = vld [vmem:[#allocation10 + $0x8] sm:$0xff]  ;;  %v378_v2 = vld [vmem:[#allocation10 + $0x10] sm:$0xff]  ;;  %vm464_vm1 = vcmask 130048   ;;  %s760_s29 = sshll.u32 %s1166_s22, 8 }
  0xb4   : > { %1084 = vsyncadd (%p1547_p7), [#allocation9], 4294966784  ;;  %v789_v3 = vpack.c.bf16 %v377_v1, %v376_v0  ;;  %v379_v4 = vld [vmem:[#allocation10 + $0x18] sm:$0xff]  ;;  %v374_v5 = vld [vmem:[%s301_s25] sm:$0xff]  ;;  %s373_s28 = scalar_lea.vmem [#allocation11], %s1415_s27  ;;  %s1458_s26 = scalar_lea.hbm %s1511_s5, %s760_s29 }
  0xb5   : > { %v793_v6 = vpack.c.bf16 %v379_v4, %v378_v2  ;;  %779 = vmatprep.mubr.msk.f32.mxu0 %vm380_vm0, %v374_v5  ;;  %v375_v7 = vld [vmem:[%s301_s25 + $0x8] sm:$0xff]  ;;  %v462_v8 = vld [vmem:[%s310_s15] sm:$0xff]  ;;  %s576_s9 = sshll.u32 %s373_s28, 4  ;;  %s563_s22 = scalar_lea.sflag [#allocation4], %s1412_s11  ;;  %s1460_s9 = int_to_ptr.vmem [resolvable:$true] %s576_s9 }
  0xb6   : > { %790 = vmatprep.subr.bf16.mxu0 %v789_v3  ;;  %786 = vmatprep.mubr.msk.f32.mxu1 %vm464_vm1, %v462_v8  ;;  %v463_v12 = vld [vmem:[%s310_s15 + $0x8] sm:$0xff]  ;;  %v546_v14 = vld [vmem:[%s319_s23] sm:$0xff]  ;;  %s1025_s12 = scalar_lea.vmem %s1460_s9, 256  ;;  %p1548_p10 = scmp.ne.s32.totalorder %s1530_s30, 0 }
  0xb7   : > { %792 = vmatpush3.bf16.msra.mxu0 %v789_v3  ;;  %v547_v13 = vld [vmem:[%s319_s23 + $0x8] sm:$0xff]  ;;  %v550_v19 = vld [vmem:[%s328_s14] sm:$0xff]  ;;  %p1026_p9 = scmp.ne.s32.totalorder %s1460_s9, %s1025_s12  ;;  %s1112_s10 = smov [#allocation11]  }
  0xb8   : > { %794 = vmatprep.subr.bf16.mxu0 %v793_v6  ;;  %v551_v16 = vld [vmem:[%s328_s14 + $0x8] sm:$0xff]  ;;  %s1029_s4 = sshll.u32 %s1112_s10, 4  ;;  %s1030_s4 = int_to_ptr.vmem [resolvable:$false] %s1029_s4 }
  0xb9   : > { %p1027_p8 = pnand %p1026_p9, %p1548_p10  ;;  %s1031_s8 = scalar_lea.vmem %s1030_s4, 512 }
  0xba   : > { %p1032_p5 = scmp.lt.s32.totalorder %s1460_s9, %s1030_s4  ;;  %p1033_p11 = scmp.lt.s32.totalorder %s1031_s8, %s1025_s12 }
  0xbb   : > { %796 = vmatpush3.bf16.msra.mxu0 %v793_v6  ;;  %p1028_p1 = pneg %p1027_p8 }
  0xbc   : > { %p1034_p4 = por %p1033_p11, %p1032_p5 }
  0xbe   : > { %780 = vmatmul.mubr.msk.f32.vlgmr.msra.gmra.mrb[0].mxu0 %vm380_vm0, %v375_v7  ;;  %p1035_p13 = pnand %p1034_p4, %p1028_p1 }
 0x191   : > { %v781_v9 = vpop.f32.mrb[0].mxu0 }
 0x192   : > { %v453_v10 = vpop.f32.mrb[1].mxu0 }
 0x193   : > { %v797_v11 = vpack.c.bf16 %v781_v9, %v453_v10 }
 0x195   : > { %798 = vmatprep.subr.bf16.mxu1 %v797_v11 }
 0x196   : > { %800 = vmatpush3.bf16.msra.mxu1 %v797_v11 }
 0x199   : > { %787 = vmatmul.mubr.msk.f32.vlgmr.msra.gmra.mrb[0].mxu1 %vm464_vm1, %v463_v12 }
 0x26c   : > { %v788_v15 = vpop.f32.mrb[0].mxu1 }
 0x26d   : > { %v549_v17 = vadd.f32 %v788_v15, %v547_v13  ;;  %v537_v18 = vpop.f32.mrb[1].mxu1 }
 0x26e   : > { %v548_v20 = vadd.f32 %v546_v14, %v537_v18 }
 0x26f   : > { %v553_v21 = vadd.f32 %v551_v16, %v549_v17 }
 0x270   : > { %v552_v22 = vadd.f32 %v550_v19, %v548_v20 }
 0x271   : > { %vm555_vm2 = vcmp.ge.f32.partialorder %v553_v21, 0.0  ;;  %v557_v23 = vmul.f32 0.01, %v553_v21 }
 0x272   : > { %vm554_vm3 = vcmp.ge.f32.partialorder %v552_v22, 0.0  ;;  %v556_v24 = vmul.f32 0.01, %v552_v22 }
 0x273   : > { %v559_v25 = vsel %vm555_vm2, %v553_v21, %v557_v23 }
 0x274   : > { %561 = vst.msk [vmem:[%s373_s28 + $0x8] sm:$0xff] %vm380_vm0, %v559_v25  ;;  %v558_v26 = vsel %vm554_vm3, %v552_v22, %v556_v24 }
 0x275   : > { %560 = vst.msk [vmem:[%s373_s28] sm:$0xff] %vm380_vm0, %v558_v26 }
 0x276   : > { %1038 = shalt.err (!%p1035_p13)
}
 0x277   : > { %s1039_s27 = scalar_lea.hbm %s1458_s26, 256  ;;  %s1043_s7 = scalar_lea.hbm %s1511_s5, 512 }
 0x278   : > { %p1040_p3 = scmp.ne.s32.totalorder %s1458_s26, %s1039_s27  ;;  %p1044_p0 = scmp.lt.u32.totalorder %s1458_s26, %s1511_s5 }
 0x279   : > { %p1045_p6 = scmp.lt.u32.totalorder %s1043_s7, %s1039_s27  ;;  %p1047_p9 = scmp.lt.u32.totalorder %s1039_s27, %s1458_s26 }
 0x27a   : > { %p1041_p2 = pnand %p1040_p3, %p1548_p10 }
 0x27b   : > { %p1046_p7 = por %p1045_p6, %p1044_p0 }
 0x27c   : > { %p1042_p12 = pneg %p1041_p2 }
 0x27d   : > { %p1048_p8 = por %p1047_p9, %p1046_p7 }
 0x27f   : > { %p1049_p1 = pnand %p1048_p8, %p1042_p12 }
 0x281   : > { %1052 = shalt.err (!%p1049_p1)
}
 0x282   : > { %s1113_s23 = smov 128   ;;  %s1114_s24 = smov 8  }
 0x283   : > { %813 = dma.vmem_to_hbm [thread:$0]  (%p1548_p10), %s1460_s9, 256, %s1458_s26, %s563_s22, %s1113_s23, %s1113_s23, %s1114_s24  }
 0x284 PF: > { %s591_s14 = sand.u32 1, %s1091_s18   ;;  %p1549_p5 = scmp.ne.s32.totalorder %s1531_s6, 0 }
 0x285   : > { %p1550_p11 = scmp.ge.s32.totalorder %s1103_s21, 2  ;;  %s592_s29 = scalar_lea.sflag [#allocation4], %s591_s14 }
 0x287   : > { %p833_p4 = pnand %p1550_p11, %p1549_p5 }
 0x289   : > { %1086 = dma.done.wait (!%p833_p4), %s592_s29, 256  }
 0x28a   : > { %1088 = vsyncadd (!%p833_p4), %s592_s29, 4294967040  ;;  %s1551_s21 = sld [smem:[#allocation17_spill]]  ;;  %s1552_s28 = sld [smem:[#allocation18_spill]] }
 0x28b   : > { %s1553_s18 = smov %s1095_s19  ;;  %s1554_s19 = smov %s1099_s20 }
 0x290   : > { %p24_p13 = scmp.ge.s32.totalorder %s1551_s21, 4   ;;  %s1555_s20 = smov %s1552_s28 }
 0x292   :  { %26 = sbr.rel (!%p24_p13) target bundleno = 12 (0xc), region = 126 }
 0x299   :  { %597 = vsyncpa [#allocation3], 1 }
 0x29a   :  { %599 = vsyncpa [#allocation3 + $0x1], 1 }
 0x29b   :  { %600 = vsyncpa [#allocation6], 1 }
 0x29c   :  { %602 = vsyncpa [#allocation6 + $0x1], 1 }
 0x29d   :  { %603 = vsyncpa [#allocation9], 1 }
 0x29e   :  { %605 = vsyncpa [#allocation9 + $0x1], 1 }
 0x29f   :  { %606 = vsyncpa [#allocation4], 1 }
 0x2a0   :  { %608 = vsyncpa [#allocation4 + $0x1], 1 }

</bundles_post_ra>
